<compile_context>
chip_gen: v7x
topology: tpu7x:2x2x1
jax: 0.10.0
libtpu: 0.0.40
codegen_flags: <defaults>
</compile_context>

<pallas_src>
import jax
import jax.numpy as jnp
from jax.experimental import pallas as pl
from jax.experimental.pallas import tpu as pltpu


_VMEM_BUDGET = 32 * 1024 * 1024  # conservative: fits v7x (64 MiB phys) with headroom


# ---------------------------------------------------------------------------
# Kernels
# ---------------------------------------------------------------------------

def _head_kernel_fused(x_ref, w1_ref, b1_ref, w2_ref, out_ref):
    """Single-K-step path. Grid axis 0 = output-feature half ('parallel').

    x_ref:  (B, H)   bf16
    w1_ref: (H, Hh)  bf16   (this core's slice of W_dense)
    b1_ref: (1, Hh)  f32
    w2_ref: (Hh, Lp) bf16   (matching slice of W_out, lane-padded)
    out_ref:(1, B, Lp) f32  partial logits (no bias; summed in wrapper)
    """
    y = jnp.tanh(
        jnp.dot(x_ref[...], w1_ref[...], preferred_element_type=jnp.float32)
        + b1_ref[...]
    )
    out_ref[0] = jnp.dot(
        y.astype(w2_ref.dtype), w2_ref[...], preferred_element_type=jnp.float32
    ).astype(out_ref.dtype)


def _head_kernel_ktiled(x_ref, w1_ref, b1_ref, w2_ref, out_ref, acc_ref):
    """K-tiled path for very large H. Grid = (ncore 'parallel', nk 'arbitrary')."""
    k = pl.program_id(1)

    @pl.when(k == 0)
    def _init():
        acc_ref[...] = jnp.zeros_like(acc_ref)

    # bf16 x bf16 -> f32 accumulate on the MXU.
    acc_ref[...] += jnp.dot(x_ref[...], w1_ref[...],
                            preferred_element_type=jnp.float32)

    @pl.when(k == pl.num_programs(1) - 1)
    def _finalize():
        y = jnp.tanh(acc_ref[...] + b1_ref[...])
        out_ref[0] = jnp.dot(
            y.astype(w2_ref.dtype), w2_ref[...], preferred_element_type=jnp.float32
        ).astype(out_ref.dtype)


# ---------------------------------------------------------------------------
# Tiling / VMEM accounting
# ---------------------------------------------------------------------------

def _vmem_bytes(B, Hh, Lp, tk, nk):
    """Rough VMEM usage for a candidate K tile (double-buffered streamed inputs)."""
    w1 = 2 * tk * Hh * 2          # streamed W_dense tile, bf16, double-buffered
    x = 2 * B * tk * 2            # streamed x tile, bf16
    w2 = 2 * Hh * Lp * 2          # resident W_out (counted double-buffered, conservative)
    b1 = 2 * Hh * 4               # resident b_dense
    out = 2 * B * Lp * 4          # output tile
    acc = (B * Hh * 4) if nk > 1 else 0
    return w1 + x + w2 + b1 + out + acc


def _pick_tk(H, Hh, B, Lp, max_tk=None):
    """Largest layout-legal K tile that fits the VMEM budget (prefer tk == H)."""
    cap = H if max_tk is None else min(H, max_tk)
    for tk in (H, 4096, 2048, 1024, 512, 256, 128):
        if tk > cap or H % tk != 0:
            continue
        if tk != H and tk % 128 != 0:
            continue
        if _vmem_bytes(B, Hh, Lp, tk, H // tk) <= _VMEM_BUDGET:
            return tk
    # Fallback: smallest legal tile (128-multiple, or full H if H isn't).
    return 128 if H % 128 == 0 else H


# ---------------------------------------------------------------------------
# Parameter preparation (ONCE per model, not per forward)
# ---------------------------------------------------------------------------

def prepare_head_params(params):
    """Cast / pad classifier weights once at load time (kernel-ready layout)."""
    H = params["w_dense"].shape[0]
    L = params["w_out"].shape[1]
    Lp = ((L + 127) // 128) * 128  # lane-pad the tiny label dim to 128
    return {
        "w_dense": params["w_dense"].astype(jnp.bfloat16),                 # (H, H)
        "b_dense": params["b_dense"].reshape(1, H).astype(jnp.float32),    # (1, H)
        "w_out": jnp.pad(params["w_out"].astype(jnp.bfloat16),
                         ((0, 0), (0, Lp - L))),                           # (H, Lp)
        "b_out": params["b_out"].astype(jnp.float32),                      # (L,)
        "num_labels": L,
    }


# ---------------------------------------------------------------------------
# Forward
# ---------------------------------------------------------------------------

def classification_head(hidden_states, prep, *, max_tk=None):
    """Fused last-token -> dense -> tanh -> out_proj (eval mode)."""
    B, S, H = hidden_states.shape
    L = prep["num_labels"]
    w1, b1, w2 = prep["w_dense"], prep["b_dense"], prep["w_out"]
    Lp = w2.shape[1]

    # Slice the last token in HBM so the kernel never touches [B, S, H].
    x_last = jnp.squeeze(jax.lax.slice_in_dim(hidden_states, S - 1, S, axis=1), axis=1)
    x_last = x_last.astype(jnp.bfloat16)                                   # (B, H)

    # Split W_dense's output features across 2 blocks (-> 2 TensorCores on v7x).
    ncore = 2 if H % 256 == 0 else 1
    Hh = H // ncore

    tk = _pick_tk(H, Hh, B, Lp, max_tk)
    nk = H // tk

    cost = pl.CostEstimate(
        flops=2 * B * H * H + 2 * B * H * Lp,
        transcendentals=B * H,
        bytes_accessed=H * H * 2 + H * Lp * 2 + B * H * 2 + H * 4 + ncore * B * Lp * 4,
    )
    cparams_common = dict(vmem_limit_bytes=_VMEM_BUDGET)

    if nk == 1:
        # No K grid, no accumulator, no init/finalize overhead.
        partials = pl.pallas_call(
            _head_kernel_fused,
            out_shape=jax.ShapeDtypeStruct((ncore, B, Lp), jnp.float32),
            grid_spec=pltpu.PrefetchScalarGridSpec(
                num_scalar_prefetch=0,
                grid=(ncore,),
                in_specs=[
                    pl.BlockSpec((B, H), lambda j: (0, 0)),     # x (full, resident)
                    pl.BlockSpec((H, Hh), lambda j: (0, j)),    # W_dense N-half
                    pl.BlockSpec((1, Hh), lambda j: (0, j)),    # b_dense N-half
                    pl.BlockSpec((Hh, Lp), lambda j: (j, 0)),   # W_out matching rows
                ],
                out_specs=pl.BlockSpec((1, B, Lp), lambda j: (j, 0, 0)),
            ),
            compiler_params=pltpu.CompilerParams(
                dimension_semantics=("parallel",), **cparams_common),
            cost_estimate=cost,
        )(x_last, w1, b1, w2)
    else:
        partials = pl.pallas_call(
            _head_kernel_ktiled,
            out_shape=jax.ShapeDtypeStruct((ncore, B, Lp), jnp.float32),
            grid_spec=pltpu.PrefetchScalarGridSpec(
                num_scalar_prefetch=0,
                grid=(ncore, nk),
                in_specs=[
                    pl.BlockSpec((B, tk), lambda j, k: (0, k)),    # x K-chunk
                    pl.BlockSpec((tk, Hh), lambda j, k: (k, j)),   # W_dense (K, N-half)
                    pl.BlockSpec((1, Hh), lambda j, k: (0, j)),    # b_dense N-half
                    pl.BlockSpec((Hh, Lp), lambda j, k: (j, 0)),   # W_out (resident)
                ],
                out_specs=pl.BlockSpec((1, B, Lp), lambda j, k: (j, 0, 0)),
                scratch_shapes=[pltpu.VMEM((B, Hh), jnp.float32)],  # f32 accumulator
            ),
            compiler_params=pltpu.CompilerParams(
                dimension_semantics=("parallel", "arbitrary"), **cparams_common),
            cost_estimate=cost,
        )(x_last, w1, b1, w2)

    # Sum the per-core partial logits, drop the lane padding, add the bias once.
    logits = jnp.sum(partials, axis=0)[:, :L] + prep["b_out"][None, :]
    return logits


def custom_model_forward(hidden_states, prep, labels=None, *, max_tk=None):
    """Mirrors CustomModel.forward, with `hidden_states` standing in for
    outputs.hidden_states[-1] of the GPT-J backbone."""
    logits = classification_head(hidden_states, prep, max_tk=max_tk)
    if labels is not None:
        # CrossEntropyLoss (mean reduction) — tiny glue reduction in plain JAX.
        logp = jax.nn.log_softmax(logits, axis=-1)
        loss = -jnp.mean(jnp.take_along_axis(logp, labels[:, None], axis=1))
        return loss, logits
    return logits


def init_params(key, hidden_size, num_labels):
    """Deterministic synthetic init matching nn.Linear shapes (stored as (in, out))."""
    k1, k2, k3, k4 = jax.random.split(key, 4)
    bound = 1.0 / jnp.sqrt(hidden_size)
    return {
        "w_dense": jax.random.uniform(k1, (hidden_size, hidden_size),
                                      minval=-bound, maxval=bound, dtype=jnp.float32),
        "b_dense": jax.random.uniform(k2, (hidden_size,),
                                      minval=-bound, maxval=bound, dtype=jnp.float32),
        "w_out": jax.random.uniform(k3, (hidden_size, num_labels),
                                    minval=-bound, maxval=bound, dtype=jnp.float32),
        "b_out": jax.random.uniform(k4, (num_labels,),
                                    minval=-bound, maxval=bound, dtype=jnp.float32),
    }


if __name__ == "__main__":
    # TODO(synk): the GPT-J-405M backbone forward (self.model(...)) has no
    # in-script Pallas equivalent; synthetic last-layer hidden states stand in.
    B, S, H, L = 2, 8, 256, 2   # H=256 -> ncore=2 (Hh=128), fused single-K path
    key = jax.random.PRNGKey(0)
    k_h, k_p, k_l = jax.random.split(key, 3)

    hidden_states = jax.random.normal(k_h, (B, S, H), dtype=jnp.float32)
    params = init_params(k_p, H, L)
    prep = prepare_head_params(params)   # once per model, NOT per forward
    labels = jax.random.randint(k_l, (B,), 0, L)

    # 1) logits-only path (fused, nk == 1)
    logits = custom_model_forward(hidden_states, prep)
    logits = jax.block_until_ready(logits)

    # 2) (loss, logits) path
    loss, logits2 = custom_model_forward(hidden_states, prep, labels=labels)
    loss = jax.block_until_ready(loss)
    logits2 = jax.block_until_ready(logits2)

    # 3) force the K-tiled kernel path (tk=128, nk=2) to exercise it too
    logits_kt = custom_model_forward(hidden_states, prep, max_tk=128)
    logits_kt = jax.block_until_ready(logits_kt)

    # Pure-JAX reference mirroring the kernel's bf16-operand / f32-accumulate math.
    xb = hidden_states[:, -1, :].astype(jnp.bfloat16).astype(jnp.float32)
    w1f = params["w_dense"].astype(jnp.bfloat16).astype(jnp.float32)
    w2f = params["w_out"].astype(jnp.bfloat16).astype(jnp.float32)
    y = jnp.tanh(xb @ w1f + params["b_dense"])
    ref = y.astype(jnp.bfloat16).astype(jnp.float32) @ w2f + params["b_out"]

    assert logits.shape == (B, L)
    assert loss.shape == ()
    assert jnp.allclose(logits, ref, atol=2e-2, rtol=2e-2), "fused path mismatch vs reference"
    assert jnp.allclose(logits_kt, ref, atol=2e-2, rtol=2e-2), "K-tiled path mismatch vs reference"
    assert jnp.allclose(logits_kt, logits, atol=1e-4, rtol=1e-4), "fused vs K-tiled mismatch"
    assert jnp.allclose(logits2, logits, atol=1e-6), "label/no-label path mismatch"

    print("KERNEL_OK")
</pallas_src>

<mosaic_0001>
module attributes {stable_mosaic.version = 11 : i64} {
  func.func @_head_kernel_fused(%arg0: i32, %arg1: memref<2x256xbf16, #tpu.memory_space<vmem>>, %arg2: memref<256x128xbf16, #tpu.memory_space<vmem>>, %arg3: memref<1x128xf32, #tpu.memory_space<vmem>>, %arg4: memref<128x128xbf16, #tpu.memory_space<vmem>>, %arg5: memref<1x2x128xf32, #tpu.memory_space<vmem>>) attributes {dimension_semantics = [#tpu.dimension_semantics<parallel>], iteration_bounds = array<i64: 2>, scalar_prefetch = 0 : i64, scratch_operands = 0 : i64, tpu.core_type = #tpu.core_type<tc>, window_params = [{pipeline_mode = #tpu.pipeline_mode<synchronous>, transform_indices = @transform_0, window_bounds = array<i64: 2, 256>}, {transform_indices = @transform_1, window_bounds = array<i64: 256, 128>}, {transform_indices = @transform_2, window_bounds = array<i64: 1, 128>}, {transform_indices = @transform_3, window_bounds = array<i64: 128, 128>}, {transform_indices = @transform_4, window_bounds = array<i64: 1, 2, 128>}]} {
    %c0 = arith.constant 0 : index
    %c0_0 = arith.constant 0 : index
    %0 = vector.load %arg1[%c0, %c0_0] : memref<2x256xbf16, #tpu.memory_space<vmem>>, vector<2x256xbf16>
    %c0_1 = arith.constant 0 : index
    %c0_2 = arith.constant 0 : index
    %1 = vector.load %arg2[%c0_1, %c0_2] : memref<256x128xbf16, #tpu.memory_space<vmem>>, vector<256x128xbf16>
    %cst = arith.constant dense<0.000000e+00> : vector<2x128xf32>
    %2 = tpu.matmul %0, %1, %cst {dimension_numbers = #tpu.dot_dimension_numbers<[1], [0], [0], [1], [0, 0, 1, 1], [], []>} : vector<2x256xbf16>, vector<256x128xbf16>, vector<2x128xf32> -> vector<2x128xf32>
    %c0_3 = arith.constant 0 : index
    %c0_4 = arith.constant 0 : index
    %3 = vector.load %arg3[%c0_3, %c0_4] : memref<1x128xf32, #tpu.memory_space<vmem>>, vector<1x128xf32>
    %4 = vector.broadcast %3 : vector<1x128xf32> to vector<2x128xf32>
    %5 = arith.addf %2, %4 : vector<2x128xf32>
    %6 = math.tanh %5 : vector<2x128xf32>
    %7 = arith.truncf %6 : vector<2x128xf32> to vector<2x128xbf16>
    %c0_5 = arith.constant 0 : index
    %c0_6 = arith.constant 0 : index
    %8 = vector.load %arg4[%c0_5, %c0_6] : memref<128x128xbf16, #tpu.memory_space<vmem>>, vector<128x128xbf16>
    %cst_7 = arith.constant dense<0.000000e+00> : vector<2x128xf32>
    %9 = tpu.matmul %7, %8, %cst_7 {dimension_numbers = #tpu.dot_dimension_numbers<[1], [0], [0], [1], [0, 0, 1, 1], [], []>} : vector<2x128xbf16>, vector<128x128xbf16>, vector<2x128xf32> -> vector<2x128xf32>
    %c0_8 = arith.constant 0 : index
    %c0_9 = arith.constant 0 : index
    %c0_10 = arith.constant 0 : index
    %10 = vector.load %arg5[%c0_8, %c0_9, %c0_10] : memref<1x2x128xf32, #tpu.memory_space<vmem>>, vector<1x2x128xf32>
    %11 = vector.shape_cast %10 : vector<1x2x128xf32> to vector<2x128xf32>
    %12 = vector.shape_cast %9 : vector<2x128xf32> to vector<1x2x128xf32>
    tpu.vector_store %arg5[%c0_8, %c0_9, %c0_10], %12 {strides = array<i32>} : memref<1x2x128xf32, #tpu.memory_space<vmem>>, vector<1x2x128xf32>,
    return
  }
  func.func @transform_0(%arg0: i32) -> (i32, i32) {
    %c0_i32 = arith.constant 0 : i32
    %c0_i32_0 = arith.constant 0 : i32
    %c0_i32_1 = arith.constant 0 : i32
    return %c0_i32, %c0_i32_0 : i32, i32
  }
  func.func @transform_1(%arg0: i32) -> (i32, i32) {
    %c0_i32 = arith.constant 0 : i32
    %c0_i32_0 = arith.constant 0 : i32
    return %c0_i32, %arg0 : i32, i32
  }
  func.func @transform_2(%arg0: i32) -> (i32, i32) {
    %c0_i32 = arith.constant 0 : i32
    %c0_i32_0 = arith.constant 0 : i32
    return %c0_i32, %arg0 : i32, i32
  }
  func.func @transform_3(%arg0: i32) -> (i32, i32) {
    %c0_i32 = arith.constant 0 : i32
    %c0_i32_0 = arith.constant 0 : i32
    return %arg0, %c0_i32 : i32, i32
  }
  func.func @transform_4(%arg0: i32) -> (i32, i32, i32) {
    %c0_i32 = arith.constant 0 : i32
    %c0_i32_0 = arith.constant 0 : i32
    %c0_i32_1 = arith.constant 0 : i32
    return %arg0, %c0_i32, %c0_i32_0 : i32, i32, i32
  }
}

</mosaic_0001>

<bundles_post_ra>
// kernel: tpu_custom_call.1
= control target key start
LH: loop header
LB: loop body
LE: loop exit
PB: predicated region body
PF: predicated region fallthrough
CT: control target
= control target key end

     0   :  { %s1381_s0 = inlined_call_operand.hbm [shape: bf16[2,256], index: 0, kind: input, shape index: {}]   ;;  %s1382_s1 = inlined_call_operand.hbm [shape: bf16[256,256], index: 1, kind: input, shape index: {}]   ;;  %s1383_s2 = inlined_call_operand.vmem [shape: f32[1,256], index: 2, kind: input, shape index: {}]   ;;  %s1384_s3 = inlined_call_operand.hbm [shape: bf16[256,128], index: 3, kind: input, shape index: {}]   ;;  %s1385_s4 = inlined_call_operand.hbm [shape: f32[2,2,128], index: 4, kind: output, shape index: {}]  }
   0x1   :  { %1395 = sst [smem:[#allocation12_spill]] %s1382_s1 }
   0x2   :  { %9 = vsyncpa [#allocation3], 0 }
   0x3   :  { %10 = vsyncpa [#allocation6], 0 }
   0x4   :  { %12 = vsyncpa [#allocation6 + $0x1], 0 }
   0x5   :  { %13 = vsyncpa [#allocation4], 0 }
   0x6   :  { %15 = vsyncpa [#allocation4 + $0x1], 0  ;;  %s1099_s15 = smov 0   ;;  %s1101_s16 = smov 0  }
   0x7   :  { %s1103_s17 = smov 0   ;;  %s1105_s18 = smov 0  }
   0x8 LB: > { %s1120_s19 = sadd.s32 1, %s1062_s18   ;;  %s49_s20 = sadd.s32 1, %s1058_s17  ;;  %s1062_s18 = sphi %s1105_s18, %s1418_s18   ;;  %s1058_s17 = sphi %s1103_s17, %s1417_s17   ;;  %s1054_s16 = sphi %s1101_s16, %s1416_s16   ;;  %s1050_s15 = sphi %s1099_s15, %s1415_s15  }
   0x9   : > { %s46_s21 = ssub.s32 %s1062_s18, %s1120_s19  ;;  %p56_p0 = scmp.ne.s32.totalorder %s1058_s17, %s1054_s16 }
   0xa   : > { %p47_p1 = scmp.eq.s32.totalorder %s46_s21, 0  ;;  %p57_p2 = scmp.eq.s32.totalorder %s1062_s18, 0 }
   0xb   : > { %p836_p4 = scmp.lt.s32.totalorder %s1062_s18, 2  ;;  %s175_s23 = sand.u32 1, %s1062_s18  }
   0xc   : > { %s1131_s22 = scalar_select %p47_p1, %s1058_s17, %s49_s20  }
   0xd   : > { %p58_p5 = por %p57_p2, %p56_p0  ;;  %s177_s24 = sand.u32 1, %s1058_s17  }
   0xe   : > { %s718_s25 = sshll.u32 %s177_s24, 7  ;;  %s719_s26 = sshll.u32 %s1062_s18, 6 }
   0xf   : > { %s1396_s1 = sld [smem:[#allocation12_spill]]  ;;  %s179_s30 = scalar_lea.vmem [#allocation5], %s718_s25 }
  0x10   : > { %s185_s5 = sshll.u32 %s179_s30, 4  ;;  %p1146_p6 = pnand %p836_p4, %p58_p5  ;;  %s1150_s5 = int_to_ptr.vmem [resolvable:$true] %s185_s5 }
  0x11   : > { %s1152_s7 = scalar_lea.sflag [#allocation6], %s175_s23 }
  0x12   : > { %s1397_s6 = scalar_select %p1146_p6, 1, 0 }
  0x13   : > { %p1389_p8 = pneg %p1146_p6 }
  0x15   : > { %s1144_s29 = scalar_lea.hbm %s1396_s1, %s719_s26  ;;  %s909_s11 = scalar_lea.hbm %s1396_s1, 4096 }
  0x16   : > { %s904_s8 = scalar_lea.hbm %s1144_s29, 2048  ;;  %p910_p11 = scmp.lt.u32.totalorder %s1144_s29, %s1396_s1 }
  0x17   : > { %p905_p7 = scmp.ne.s32.totalorder %s1144_s29, %s904_s8  ;;  %p911_p12 = scmp.lt.u32.totalorder %s909_s11, %s904_s8 }
  0x18   : > { %p913_p1 = scmp.lt.u32.totalorder %s904_s8, %s1144_s29 }
  0x19   : > { %p907_p9 = pnand %p1389_p8, %p905_p7  ;;  %p912_p13 = por %p911_p12, %p910_p11 }
  0x1b   : > { %p908_p10 = pneg %p907_p9  ;;  %p914_p2 = por %p913_p1, %p912_p13 }
  0x1d   : > { %p915_p4 = pnand %p914_p2, %p908_p10 }
  0x1f   : > { %918 = shalt.err (!%p915_p4)
}
  0x20   : > { %s919_s14 = scalar_lea.vmem %s1150_s5, 2048  ;;  %s1064_s20 = smov [#allocation5]  }
  0x21   : > { %p920_p5 = scmp.ne.s32.totalorder %s1150_s5, %s919_s14  ;;  %s924_s21 = sshll.u32 %s1064_s20, 4  ;;  %s925_s21 = int_to_ptr.vmem [resolvable:$false] %s924_s21 }
  0x22   : > { %s926_s23 = scalar_lea.vmem %s925_s21, 4096  ;;  %p927_p3 = scmp.lt.s32.totalorder %s1150_s5, %s925_s21 }
  0x23   : > { %p922_p7 = pnand %p920_p5, %p1389_p8  ;;  %p928_p11 = scmp.lt.s32.totalorder %s926_s23, %s919_s14 }
  0x25   : > { %p923_p9 = pneg %p922_p7  ;;  %p929_p12 = por %p928_p11, %p927_p3 }
  0x27   : > { %p930_p13 = pnand %p929_p12, %p923_p9 }
  0x29   : > { %933 = shalt.err (!%p930_p13)
}
  0x2a   : > { %s1065_s25 = smov 128   ;;  %s1386_s26 = smov 64  }
  0x2b   : > { %s1387_s27 = smov 4   ;;  %s1183_s28 = sadd.s32 4294967295, %s1062_s18  }
  0x2c   : > { %827 = dma.hbm_to_vmem [thread:$0]  (!%p1146_p6), %s1144_s29, 2048, %s1150_s5, %s1152_s7, %s1065_s25, %s1386_s26, %s1387_s27  }
  0x2d   : > { %s714_s30 = sadd.s32 4294967294, %s1062_s18   ;;  %p62_p3 = scmp.ne.s32.totalorder %s1054_s16, %s1050_s15 }
  0x2e   : > { %p1388_p10 = scmp.eq.s32.totalorder %s1183_s28, 0  ;;  %p138_p1 = scmp.eq.s32.totalorder %s1183_s28, 1 }
  0x2f   : > { %p144_p2 = scmp.eq.s32.totalorder %s714_s30, 1  ;;  %p715_p4 = scmp.ge.s32.totalorder %s1062_s18, 1 }
  0x30   : > { %p1193_p5 = por %p1388_p10, %p62_p3  ;;  %p1200_p7 = por %p138_p1, %p56_p0 }
  0x31   : > { %p1204_p9 = por %p144_p2, %p62_p3  ;;  %p151_p11 = scmp.lt.s32.totalorder %s1062_s18, 3 }
  0x32   : > { %s1398_s8 = scalar_select %p1193_p5, 1, 0 }
  0x33   : > { %s1399_s29 = scalar_select %p1200_p7, 1, 0 }
  0x34   : > { %s1400_s5 = scalar_select %p1204_p9, 1, 0 }
  0x35   : > { %p1209_p12 = pnand %p715_p4, %p151_p11  ;;  %s1068_s10 = smov [#allocation2]  }
  0x36   : > { %s164_s11 = sshll.u32 %s1068_s10, 4  ;;  %s720_s12 = sshll.u32 %s177_s24, 6  ;;  %s165_s11 = int_to_ptr.vmem [resolvable:$true] %s164_s11 }
  0x37   : > { %s1401_s9 = scalar_select %p1209_p12, 1, 0 }
  0x38   : > { %p820_p13 = pneg %p1209_p12  ;;  %s758_s13 = sshll.u32 %s1062_s18, 10 }
  0x39   : > { %s205_s14 = scalar_lea.vmem [#allocation7], %s720_s12  ;;  %s1227_s30 = scalar_lea.hbm %s1384_s3, %s758_s13 }
  0x3a   : > { %s212_s20 = sshll.u32 %s205_s14, 4  ;;  %p1220_p0 = pnand %p820_p13, %p1388_p10  ;;  %s1229_s20 = int_to_ptr.vmem [resolvable:$true] %s212_s20 }
  0x3b   : > { %s934_s26 = scalar_lea.hbm %s1381_s0, 32 }
  0x3c   : > { %p935_p3 = scmp.ne.s32.totalorder %s1381_s0, %s934_s26  ;;  %p936_p1 = pneg %p1220_p0 }
  0x3d   : > { %p941_p11 = scmp.lt.u32.totalorder %s934_s26, %s1381_s0 }
  0x3e   : > { %p937_p2 = pnand %p936_p1, %p935_p3 }
  0x40   : > { %p938_p4 = pneg %p937_p2 }
  0x42   : > { %p943_p13 = pnand %p941_p11, %p938_p4 }
  0x44   : > { %946 = shalt.err (!%p943_p13)
}
  0x45   : > { %s947_s13 = scalar_lea.vmem %s165_s11, 32  ;;  %p955_p7 = scmp.lt.s32.totalorder %s165_s11, %s165_s11 }
  0x46   : > { %p948_p10 = scmp.ne.s32.totalorder %s165_s11, %s947_s13  ;;  %p956_p5 = scmp.lt.s32.totalorder %s947_s13, %s947_s13 }
  0x48   : > { %p950_p8 = pnand %p948_p10, %p936_p1  ;;  %p957_p12 = por %p956_p5, %p955_p7 }
  0x4a   : > { %p951_p9 = pneg %p950_p8 }
  0x4c   : > { %p958_p6 = pnand %p957_p12, %p951_p9 }
  0x4e   : > { %961 = shalt.err (!%p958_p6)
}
  0x4f   : > { %823 = dma.hbm_to_vmem [thread:$0]  (!%p1220_p0), %s1381_s0, 32, %s165_s11, [#allocation3]  }
  0x50   : > { %s962_s1 = scalar_lea.hbm %s1227_s30, 1024  ;;  %p1403_p10 = scmp.ne.s32.totalorder %s1397_s6, 0 }
  0x51   : > { %p963_p3 = scmp.ne.s32.totalorder %s1227_s30, %s962_s1  ;;  %s967_s24 = scalar_lea.hbm %s1384_s3, 2048 }
  0x52   : > { %p1404_p8 = pneg %p1403_p10  ;;  %p968_p6 = scmp.lt.u32.totalorder %s1227_s30, %s1384_s3 }
  0x53   : > { %p969_p5 = scmp.lt.u32.totalorder %s967_s24, %s962_s1  ;;  %p971_p9 = scmp.lt.u32.totalorder %s962_s1, %s1227_s30 }
  0x54   : > { %p965_p1 = pnand %p963_p3, %p1404_p8 }
  0x55   : > { %p970_p7 = por %p969_p5, %p968_p6 }
  0x56   : > { %p966_p2 = pneg %p965_p1 }
  0x57   : > { %p972_p12 = por %p971_p9, %p970_p7 }
  0x59   : > { %p973_p4 = pnand %p972_p12, %p966_p2 }
  0x5b   : > { %976 = shalt.err (!%p973_p4)
}
  0x5c   : > { %s977_s11 = scalar_lea.vmem %s1229_s20, 1024  ;;  %p1405_p11 = pmov %p1404_p8 }
  0x5d   : > { %p978_p0 = scmp.ne.s32.totalorder %s1229_s20, %s977_s11  ;;  %s1069_s12 = smov [#allocation7]  }
  0x5e   : > { %s982_s14 = sshll.u32 %s1069_s12, 4  ;;  %s983_s14 = int_to_ptr.vmem [resolvable:$false] %s982_s14 }
  0x5f   : > { %p980_p13 = pnand %p978_p0, %p1405_p11  ;;  %s984_s13 = scalar_lea.vmem %s983_s14, 2048 }
  0x60   : > { %p985_p8 = scmp.lt.s32.totalorder %s1229_s20, %s983_s14  ;;  %p986_p1 = scmp.lt.s32.totalorder %s984_s13, %s977_s11 }
  0x61   : > { %p981_p3 = pneg %p980_p13 }
  0x62   : > { %p987_p6 = por %p986_p1, %p985_p8 }
  0x64   : > { %p988_p5 = pnand %p987_p6, %p981_p3 }
  0x66   : > { %991 = shalt.err (!%p988_p5)
}
  0x67   : > { %s1406_s23 = smov 4   ;;  %s1407_s25 = smov 64  }
  0x68   : > { %830 = dma.hbm_to_vmem [thread:$0]  (!%p1403_p10), %s1227_s30, 1024, %s1229_s20, %s1152_s7, %s1407_s25, %s1407_s25, %s1406_s23  }
  0x69   : > { %p1408_p2 = scmp.ne.s32.totalorder %s1401_s9, 0 }
  0x6a   : > { %p1409_p7 = scmp.eq.s32.totalorder (!%p1408_p2), %s1183_s28, 0 }
  0x6b   : > { %224 = sbr.rel (%p1408_p2) target bundleno = 610 (0x262), region = 36 }
  0x72   : > { %1037 = dma.done.wait (%p1409_p7), [#allocation3], 32   ;;  %p1410_p9 = pmov %p1409_p7 }
  0x73   : > { %s230_s6 = sand.u32 1, %s1183_s28   ;;  %s1282_s1 = sand.u32 1, %s1054_s16  }
  0x74   : > { %1039 = vsyncadd (%p1410_p9), [#allocation3], 4294967264  ;;  %s725_s26 = sshll.u32 %s1282_s1, 7  ;;  %s231_s27 = scalar_lea.sflag [#allocation6], %s230_s6 }
  0x75   : > { %s1285_s24 = scalar_lea.vmem [#allocation5], %s725_s26  ;;  %p1411_p10 = scmp.ne.s32.totalorder %s1398_s8, 0 }
  0x77   : > { %1041 = dma.done.wait (%p1411_p10), %s231_s27, 3072  }
  0x78   : > { %1043 = vsyncadd (%p1411_p10), %s231_s27, 4294964224  ;;  %v1070_v0 = vmov 0.0   ;;  %v878_v1 = vld [vmem:[%s1285_s24 + $0x40] sm:$0xff]   ;;  %v880_v3 = vld [vmem:[%s1285_s24 + $0x48] sm:$0xff]   ;;  %v1071_v7 = vmov 1966171168   ;;  %v333_v9 = vlaneseq }
  0x79   : > { %790 = vmatprep.subr.bf16.mxu1 %v1070_v0  ;;  %v879_v2 = vld [vmem:[%s1285_s24] sm:$0xff]   ;;  %759 = vmatprep.subr.bf16.mxu0 %v878_v1  ;;  %v881_v4 = vld [vmem:[%s1285_s24 + $0x8] sm:$0xff]   ;;  %v882_v5 = vld [vmem:[%s1285_s24 + $0x50] sm:$0xff]   ;;  %v331_v8 = vunpack.c.l.s4 %v1071_v7  ;;  %s726_s7 = sshll.u32 %s1282_s1, 6  ;;  %vm1072_vm0 = vmmov 0   ;;  %p276_p12 = scmp.lt.s32.totalorder %s1183_s28, 1 }
  0x7a   : > { %760 = vmatpush3.bf16.msra.mxu0 %v879_v2  ;;  %v883_v6 = vld [vmem:[%s1285_s24 + $0x10] sm:$0xff]   ;;  %v884_v10 = vld [vmem:[%s1285_s24 + $0x58] sm:$0xff]   ;;  %v334_v13 = vshrl.u32 %v333_v9, 7  ;;  %v886_v14 = vld [vmem:[%s1285_s24 + $0x60] sm:$0xff]   ;;  %s1304_s8 = scalar_lea.vmem [#allocation7], %s726_s7  ;;  %806 = vmatprep.mubr.msk.bf16.mxu1 %vm1072_vm0, %v1070_v0  ;;  %s727_s10 = sshll.u32 %s1282_s1, 1 }
  0x7b   : > { %761 = vmatprep.subr.bf16.mxu0 %v880_v3  ;;  %v885_v11 = vld [vmem:[%s1285_s24 + $0x18] sm:$0xff]   ;;  %v332_v12 = vunpack.c.0.s8 %v331_v8  ;;  %v887_v15 = vld [vmem:[%s1285_s24 + $0x20] sm:$0xff]   ;;  %v888_v16 = vld [vmem:[%s1285_s24 + $0x68] sm:$0xff]   ;;  %s277_s9 = scalar_select %p276_p12, %s1183_s28, 1 }
  0x7c   : > { %v729_v18 = vld.sshfl [vmem:[#allocation2] sm:$0x11 pattern:$0x75316420]  ;;  %v889_v19 = vld [vmem:[%s1285_s24 + $0x28] sm:$0xff]   ;;  %v894_v21 = vld [vmem:[%s1304_s8] sm:$0xff]  }
  0x7d   : > { %v335_v17 = vsub.s32 %v332_v12, %v334_v13  ;;  %v329_v20 = vcombine.high %v729_v18, %v729_v18  ;;  %v890_v22 = vld [vmem:[%s1285_s24 + $0x70] sm:$0xff]   ;;  %791 = vmatpush3.bf16.msra.mxu1 %v894_v21  ;;  %v895_v24 = vld [vmem:[%s1304_s8 + $0x8] sm:$0xff]   ;;  %v892_v27 = vld [vmem:[%s1285_s24 + $0x78] sm:$0xff]   ;;  %s278_s21 = scalar_lea.vmem %s1383_s2, %s277_s9  ;;  %s275_s11 = scalar_lea.vmem [#allocation8], %s727_s10 }
  0x7e   : > { %762 = vmatpush3.bf16.msra.mxu0 %v881_v4  ;;  %792 = vmatprep.subr.bf16.mxu1 %v1070_v0  ;;  %v891_v25 = vld [vmem:[%s1285_s24 + $0x30] sm:$0xff]   ;;  %v893_v28 = vld [vmem:[%s1285_s24 + $0x38] sm:$0xff]   ;;  %v898_v31 = vld [vmem:[%s1304_s8 + $0x20] sm:$0xff]   ;;  %s603_s12 = sshll.u32 %s275_s11, 4  ;;  %s755_s14 = sshll.u32 %s1183_s28, 5  ;;  %s1334_s12 = int_to_ptr.vmem [resolvable:$true] %s603_s12 }
  0x7f   : > { %763 = vmatprep.subr.bf16.mxu0 %v882_v5  ;;  %v343_v23 = vrot.slane %v329_v20, %v335_v17  ;;  %v896_v26 = vld [vmem:[%s1304_s8 + $0x10] sm:$0xff]   ;;  %v336_v29 = vrot.slane %v729_v18, %v335_v17  ;;  %v897_v30 = vld [vmem:[%s1304_s8 + $0x18] sm:$0xff]   ;;  %v899_v32 = vld [vmem:[%s1304_s8 + $0x28] sm:$0xff]   ;;  %s1339_s25 = scalar_lea.hbm %s1385_s4, %s755_s14  ;;  %s590_s6 = scalar_lea.sflag [#allocation4], %s1282_s1 }
  0x80   : > { %v900_v33 = vld [vmem:[%s1304_s8 + $0x30] sm:$0xff]   ;;  %v901_v34 = vld [vmem:[%s1304_s8 + $0x38] sm:$0xff]   ;;  %s992_s26 = scalar_lea.vmem %s1334_s12, 32  ;;  %p1412_p0 = scmp.ne.s32.totalorder %s1399_s29, 0 }
  0x81   : > { %474 = vmatprep.mubr.bf16.mxu0 %v343_v23  ;;  %793 = vmatpush3.bf16.msra.mxu1 %v895_v24  ;;  %v728_v36 = vld [vmem:[%s278_s21] ss:$0 sm:$0xff]  ;;  %p993_p4 = scmp.ne.s32.totalorder %s1334_s12, %s992_s26  ;;  %s1073_s28 = smov [#allocation8]  }
  0x82   : > { %764 = vmatpush3.bf16.msra.mxu0 %v883_v6  ;;  %794 = vmatprep.subr.bf16.mxu1 %v1070_v0  ;;  %s996_s27 = sshll.u32 %s1073_s28, 4  ;;  %s997_s27 = int_to_ptr.vmem [resolvable:$false] %s996_s27 }
  0x83   : > { %765 = vmatprep.subr.bf16.mxu0 %v884_v10  ;;  %p994_p11 = pnand %p993_p4, %p1412_p0  ;;  %s998_s24 = scalar_lea.vmem %s997_s27, 64 }
  0x84   : > { %p999_p3 = scmp.lt.s32.totalorder %s1334_s12, %s997_s27  ;;  %p1000_p8 = scmp.lt.s32.totalorder %s998_s24, %s992_s26 }
  0x85   : > { %795 = vmatpush3.bf16.msra.mxu1 %v896_v26  ;;  %p995_p13 = pneg %p994_p11 }
  0x86   : > { %766 = vmatpush3.bf16.msra.mxu0 %v885_v11  ;;  %796 = vmatprep.subr.bf16.mxu1 %v1070_v0  ;;  %p1001_p1 = por %p1000_p8, %p999_p3 }
  0x87   : > { %767 = vmatprep.subr.bf16.mxu0 %v886_v14 }
  0x88   : > { %p1002_p6 = pnand %p1001_p1, %p995_p13 }
  0x89   : > { %797 = vmatpush3.bf16.msra.mxu1 %v897_v30 }
  0x8a   : > { %768 = vmatpush3.bf16.msra.mxu0 %v887_v15  ;;  %798 = vmatprep.subr.bf16.mxu1 %v1070_v0 }
  0x8b   : > { %769 = vmatprep.subr.bf16.mxu0 %v888_v16 }
  0x8d   : > { %799 = vmatpush3.bf16.msra.mxu1 %v898_v31 }
  0x8e   : > { %770 = vmatpush3.bf16.msra.mxu0 %v889_v19  ;;  %800 = vmatprep.subr.bf16.mxu1 %v1070_v0 }
  0x8f   : > { %771 = vmatprep.subr.bf16.mxu0 %v890_v22 }
  0x91   : > { %801 = vmatpush3.bf16.msra.mxu1 %v899_v32 }
  0x92   : > { %772 = vmatpush3.bf16.msra.mxu0 %v891_v25  ;;  %802 = vmatprep.subr.bf16.mxu1 %v1070_v0 }
  0x93   : > { %773 = vmatprep.subr.bf16.mxu0 %v892_v27 }
  0x95   : > { %803 = vmatpush3.bf16.msra.mxu1 %v900_v33 }
  0x96   : > { %774 = vmatpush3.bf16.msra.mxu0 %v893_v28  ;;  %804 = vmatprep.subr.bf16.mxu1 %v1070_v0 }
  0x99   : > { %475 = vmatmul.mubr.bf16.vlgmr.msra.gmra.mrb[0].mxu0 %v336_v29  ;;  %805 = vmatpush3.bf16.msra.mxu1 %v901_v34 }
 0x16c   : > { %v775_v35 = vpop.f32.mrb[0].mxu0 }
 0x16d   : > { %v776_v37 = vpop.f32.mrb[1].mxu0 }
 0x16e   : > { %v777_v38 = vadd.f32 %v776_v37, %v775_v35  ;;  %v778_v39 = vpop.f32.mrb[2].mxu0 }
 0x16f   : > { %v779_v40 = vpop.f32.mrb[3].mxu0 }
 0x170   : > { %v477_v41 = vadd.f32 %v777_v38, %v728_v36 }
 0x172   : > { %902 = vtanh.f32 %v477_v41 }
 0x17c   : > { %v903_v42 = vpop.eup %902 }
 0x17d   : > { %v483_v43 = vpack.c.bf16 %v903_v42, %v903_v42 }
 0x17f   : > { %807 = vmatmul.mubr.bf16.vlgmr.msra.gmra.mrb[0].mxu1 %v483_v43 }
 0x252   : > { %v582_v44 = vpop.f32.mrb[0].mxu1 }
 0x253   : > { %588 = vst [vmem:[%s275_s11] sm:$0x3] %v582_v44  ;;  %v808_v45 = vpop.f32.mrb[1].mxu1 }
 0x254   : > { %v585_v46 = vpop.f32.mrb[2].mxu1 }
 0x255   : > { %1005 = shalt.err (!%p1002_p6)
}
 0x256   : > { %s1006_s1 = scalar_lea.hbm %s1339_s25, 32  ;;  %s1010_s9 = scalar_lea.hbm %s1385_s4, 64 }
 0x257   : > { %p1007_p5 = scmp.ne.s32.totalorder %s1339_s25, %s1006_s1  ;;  %p1011_p9 = scmp.lt.u32.totalorder %s1339_s25, %s1385_s4 }
 0x258   : > { %p1012_p10 = scmp.lt.u32.totalorder %s1010_s9, %s1006_s1  ;;  %p1014_p4 = scmp.lt.u32.totalorder %s1006_s1, %s1339_s25 }
 0x259   : > { %p1008_p2 = pnand %p1007_p5, %p1412_p0 }
 0x25a   : > { %p1013_p12 = por %p1012_p10, %p1011_p9 }
 0x25b   : > { %p1009_p7 = pneg %p1008_p2 }
 0x25c   : > { %p1015_p11 = por %p1014_p4, %p1013_p12 }
 0x25e   : > { %p1016_p13 = pnand %p1015_p11, %p1009_p7 }
 0x260   : > { %1019 = shalt.err (!%p1016_p13)
}
 0x261   : > { %818 = dma.vmem_to_hbm [thread:$0]  (%p1412_p0), %s1334_s12, 32, %s1339_s25, %s590_s6   ;;  %v809_v47 = vpop.f32.mrb[3].mxu1 }
 0x262 PF: > { %s615_s21 = sand.u32 1, %s1050_s15   ;;  %p1413_p3 = scmp.ne.s32.totalorder %s1400_s5, 0 }
 0x263   : > { %p1414_p8 = scmp.ge.s32.totalorder %s1062_s18, 2  ;;  %s616_s10 = scalar_lea.sflag [#allocation4], %s615_s21 }
 0x265   : > { %p832_p1 = pnand %p1414_p8, %p1413_p3 }
 0x267   : > { %1045 = dma.done.wait (!%p832_p1), %s616_s10, 32  }
 0x268   : > { %1047 = vsyncadd (!%p832_p1), %s616_s10, 4294967264  ;;  %p18_p6 = scmp.ge.s32.totalorder %s1120_s19, 4   ;;  %s1415_s15 = smov %s1054_s16 }
 0x269   : > { %s1416_s16 = smov %s1058_s17  ;;  %s1417_s17 = smov %s1131_s22 }
 0x26a   : > { %s1418_s18 = smov %s1120_s19  ;;  %20 = sbr.rel (!%p18_p6) target bundleno = 8 (0x8), region = 100 }
 0x271   :  { %621 = vsyncpa [#allocation3], 1 }
 0x272   :  { %623 = vsyncpa [#allocation3 + $0x1], 1 }
 0x273   :  { %624 = vsyncpa [#allocation6], 1 }
 0x274   :  { %626 = vsyncpa [#allocation6 + $0x1], 1 }
 0x275   :  { %627 = vsyncpa [#allocation4], 1 }
 0x276   :  { %629 = vsyncpa [#allocation4 + $0x1], 1 }

</bundles_post_ra>
